<compile_context>
chip_gen: v7x
topology: tpu7x:2x2x1
jax: 0.10.0
libtpu: 0.0.40
codegen_flags: <defaults>
</compile_context>

<pallas_src>
import functools

import numpy as np
import jax
import jax.numpy as jnp
from jax.experimental import pallas as pl
from jax.experimental.pallas import tpu as pltpu

BN_EPS = 1e-5
LEAKY_SLOPE = 0.01        # PyTorch LeakyReLU default negative_slope
LANE = 128                # TPU lane width; fused head output padded to this
NEG_BIG = -1e30           # "minus infinity" for masked / padded lanes


def _bn_normalize(x):
    """Training-mode BatchNorm1d normalization only (affine folded into the
    following Linear). scale/shift form; var = E[x^2] - mean^2."""
    mean = jnp.mean(x, axis=0, keepdims=True)
    mean_sq = jnp.mean(x * x, axis=0, keepdims=True)
    var = mean_sq - mean * mean
    s = jax.lax.rsqrt(var + BN_EPS)
    return x * s - mean * s


def _leaky_relu(x):
    # slope < 1  =>  max(x, slope*x) == LeakyReLU(x)
    return jnp.maximum(x, LEAKY_SLOPE * x)


def _make_policy_kernel(feature_dim, num_players):
    F, Kc = feature_dim, num_players

    def policy_kernel(x_ref, w_ref, b_ref, out_ref):
        f32 = jnp.float32
        wdt = w_ref.dtype   # f32 or bf16 matmul weights; elementwise stays f32

        x = x_ref[...].astype(f32)

        # ---------------- shared trunk (BN affines pre-folded) -------------
        h = _bn_normalize(x)
        h = jnp.dot(h.astype(wdt), w_ref[0, :F, :],
                    preferred_element_type=f32) + b_ref[0:1, :]
        h = _leaky_relu(h)

        h = _bn_normalize(h)
        h = jnp.dot(h.astype(wdt), w_ref[1],
                    preferred_element_type=f32) + b_ref[1:2, :]
        h = _leaky_relu(h)

        head = _bn_normalize(h)       # padded cols (>= 64) stay exactly zero

        # -------- fused critic|actor heads: one lane-dense MXU push --------
        logits = jnp.dot(head.astype(wdt), w_ref[2],
                         preferred_element_type=f32) + b_ref[2:3, :]
        # lanes >= Kc+Ka carry a -1e30 bias (set host-side) -> they vanish
        # from the actor max / sum and exp() underflows to exactly 0.

        lane = jax.lax.broadcasted_iota(jnp.int32, logits.shape, 1)
        cmask = lane < Kc
        neg = jnp.float32(NEG_BIG)
        m_c = jnp.max(jnp.where(cmask, logits, neg), axis=1, keepdims=True)
        m_a = jnp.max(jnp.where(cmask, neg, logits), axis=1, keepdims=True)
        e = jnp.exp(logits - jnp.where(cmask, m_c, m_a))
        s_c = jnp.sum(jnp.where(cmask, e, 0.0), axis=1, keepdims=True)
        s_a = jnp.sum(jnp.where(cmask, 0.0, e), axis=1, keepdims=True)
        # exact division: rows sum to 1 within f32 rounding
        out_ref[...] = (e / jnp.where(cmask, s_c, s_a)).astype(out_ref.dtype)

    return policy_kernel


def prepare_params(params, matmul_dtype=jnp.float32):
    """One-time host-side prep:
      * fold BN0/BN1/BN2 (gamma, beta) into the following Linear layer,
      * fuse critic|actor heads into one lane-padded (64, 128) matrix,
      * pack the 3 weight matrices into a single (3, 128, 128) slab and all
        biases into a single (3, 128) f32 slab  ->  3 kernel operands total,
      * cast the weight slab to `matmul_dtype` (bf16 halves weight DMA bytes
        and is MXU-native on v5e/v6e/v7x; elementwise math stays f32)."""
    F, H1 = params["w1"].shape
    H2 = params["w2"].shape[1]
    Kc = params["wc"].shape[1]
    Ka = params["wa"].shape[1]
    # TODO(synk): support feature_dim > 128 / hidden sizes > 128 with a wider slab.
    assert F <= LANE and H1 == LANE and H2 <= LANE and Kc + Ka <= LANE

    # fold BN0 -> Linear1, BN1 -> Linear2, BN2 -> fused heads
    # (z*g + b) @ W + c  ==  z @ (g^T * W) + (b @ W + c)
    w1 = params["w1"] * params["g0"].T                      # (F, 128)
    b1 = params["be0"] @ params["w1"] + params["b1"]        # (1, 128)
    w2 = params["w2"] * params["g1"].T                      # (128, 64)
    b2 = params["be1"] @ params["w2"] + params["b2"]        # (1, 64)

    wh_cat = jnp.zeros((H2, LANE), jnp.float32)
    wh_cat = wh_cat.at[:, :Kc].set(params["wc"]).at[:, Kc:Kc + Ka].set(params["wa"])
    bh_cat = jnp.zeros((1, LANE), jnp.float32)
    bh_cat = bh_cat.at[:, :Kc].set(params["bc"]).at[:, Kc:Kc + Ka].set(params["ba"])
    wh = wh_cat * params["g2"].T                            # (64, 128)
    bh = params["be2"] @ wh_cat + bh_cat                    # (1, 128)
    bh = bh.at[:, Kc + Ka:].set(NEG_BIG)                    # kill padded head lanes

    W = jnp.zeros((3, LANE, LANE), jnp.float32)
    W = W.at[0, :F, :H1].set(w1)
    W = W.at[1, :H1, :H2].set(w2)       # cols >= 64 zero -> stay zero downstream
    W = W.at[2, :H2, :].set(wh)         # rows >= 64 zero -> padded head cols inert

    bias = jnp.zeros((3, LANE), jnp.float32)
    bias = bias.at[0, :H1].set(b1[0])
    bias = bias.at[1, :H2].set(b2[0])
    bias = bias.at[2, :].set(bh[0])

    return {"W": W.astype(matmul_dtype), "bias": bias}


@functools.partial(jax.jit, static_argnames=("num_players", "action_dim"))
def policy_forward(x, prep, *, num_players, action_dim):
    """Run the full Policy forward pass (whole batch) in one Pallas kernel."""
    B, F = x.shape
    vmem = pl.BlockSpec(memory_space=pltpu.MemorySpace.VMEM)
    out = pl.pallas_call(
        _make_policy_kernel(F, num_players),
        out_shape=jax.ShapeDtypeStruct((B, LANE), jnp.float32),
        in_specs=[vmem, vmem, vmem],
        out_specs=vmem,
    )(x, prep["W"], prep["bias"])
    critic = out[:, :num_players]
    actor = out[:, num_players:num_players + action_dim]
    return critic, actor


def init_params(key, feature_dim, action_dim, num_players):
    """Deterministic synthetic parameter init (PyTorch-like scales)."""
    ks = jax.random.split(key, 4)

    def lin(k, fan_in, fan_out):
        kw, kb = jax.random.split(k)
        bound = 1.0 / np.sqrt(fan_in)
        w = jax.random.uniform(kw, (fan_in, fan_out), jnp.float32, -bound, bound)
        b = jax.random.uniform(kb, (1, fan_out), jnp.float32, -bound, bound)
        return w, b

    w1, b1 = lin(ks[0], feature_dim, 128)
    w2, b2 = lin(ks[1], 128, 64)
    wc, bc = lin(ks[2], 64, num_players)
    wa, ba = lin(ks[3], 64, action_dim)

    # BatchNorm affine params: PyTorch default init (weight=1, bias=0)
    return dict(
        g0=jnp.ones((1, feature_dim), jnp.float32),
        be0=jnp.zeros((1, feature_dim), jnp.float32),
        w1=w1, b1=b1,
        g1=jnp.ones((1, 128), jnp.float32),
        be1=jnp.zeros((1, 128), jnp.float32),
        w2=w2, b2=b2,
        g2=jnp.ones((1, 64), jnp.float32),
        be2=jnp.zeros((1, 64), jnp.float32),
        wc=wc, bc=bc,
        wa=wa, ba=ba,
    )


def policy_forward_ref(x, p):
    """Pure-JAX reference (PyTorch-faithful, f32) for correctness check."""
    def bn(x, g, b):
        m = jnp.mean(x, axis=0, keepdims=True)
        v = jnp.mean((x - m) ** 2, axis=0, keepdims=True)
        return (x - m) / jnp.sqrt(v + BN_EPS) * g + b

    def lrelu(x):
        return jnp.where(x > 0, x, LEAKY_SLOPE * x)

    x = bn(x, p["g0"], p["be0"])
    x = lrelu(x @ p["w1"] + p["b1"])
    x = bn(x, p["g1"], p["be1"])
    x = lrelu(x @ p["w2"] + p["b2"])
    head = bn(x, p["g2"], p["be2"])
    critic = jax.nn.softmax(head @ p["wc"] + p["bc"], axis=1)
    actor = jax.nn.softmax(head @ p["wa"] + p["ba"], axis=1)
    return critic, actor


if __name__ == "__main__":
    # small shapes consistent with the module: batch=8 game states,
    # feature_dim=32, action_dim=8, num_players=4
    B, FEATURE_DIM, ACTION_DIM, NUM_PLAYERS = 8, 32, 8, 4

    key = jax.random.PRNGKey(0)
    k_x, k_p = jax.random.split(key)

    x = jax.random.normal(k_x, (B, FEATURE_DIM), jnp.float32)
    params = init_params(k_p, FEATURE_DIM, ACTION_DIM, NUM_PLAYERS)
    critic_ref, actor_ref = policy_forward_ref(x, params)

    # --- f32 weight path (faithful to the PyTorch module) -------------------
    prep_f32 = prepare_params(params, matmul_dtype=jnp.float32)
    critic_out, actor_out = policy_forward(
        x, prep_f32, num_players=NUM_PLAYERS, action_dim=ACTION_DIM)
    jax.block_until_ready((critic_out, actor_out))

    assert np.allclose(np.asarray(critic_out), np.asarray(critic_ref), atol=1e-3)
    assert np.allclose(np.asarray(actor_out), np.asarray(actor_ref), atol=1e-3)
    assert np.allclose(np.asarray(critic_out).sum(axis=1), 1.0, atol=1e-5)
    assert np.allclose(np.asarray(actor_out).sum(axis=1), 1.0, atol=1e-5)

    # --- bf16 weight path (halves weight DMA bytes; MXU-native everywhere) --
    prep_bf16 = prepare_params(params, matmul_dtype=jnp.bfloat16)
    c_bf, a_bf = policy_forward(
        x, prep_bf16, num_players=NUM_PLAYERS, action_dim=ACTION_DIM)
    jax.block_until_ready((c_bf, a_bf))

    assert np.allclose(np.asarray(c_bf), np.asarray(critic_ref), atol=5e-2)
    assert np.allclose(np.asarray(a_bf), np.asarray(actor_ref), atol=5e-2)
    assert np.allclose(np.asarray(c_bf).sum(axis=1), 1.0, atol=1e-4)
    assert np.allclose(np.asarray(a_bf).sum(axis=1), 1.0, atol=1e-4)

    print("KERNEL_OK")
</pallas_src>

<mosaic_0001>
module attributes {stable_mosaic.version = 11 : i64} {
  func.func @policy_kernel(%arg0: memref<8x32xf32, #tpu.memory_space<vmem>>, %arg1: memref<3x128x128xf32, #tpu.memory_space<vmem>>, %arg2: memref<3x128xf32, #tpu.memory_space<vmem>>, %arg3: memref<8x128xf32, #tpu.memory_space<vmem>>) attributes {dimension_semantics = [], scalar_prefetch = 0 : i64, scratch_operands = 0 : i64, tpu.core_type = #tpu.core_type<tc>} {
    %c0 = arith.constant 0 : index
    %c0_0 = arith.constant 0 : index
    %0 = vector.load %arg0[%c0, %c0_0] : memref<8x32xf32, #tpu.memory_space<vmem>>, vector<8x32xf32>
    %cst = arith.constant dense<0.000000e+00> : vector<32xf32>
    %1 = vector.multi_reduction <add>, %0, %cst [0] : vector<8x32xf32> to vector<32xf32>
    %2 = vector.shape_cast %1 : vector<32xf32> to vector<1x32xf32>
    %cst_1 = arith.constant 8.000000e+00 : f32
    %3 = vector.broadcast %cst_1 : f32 to vector<1x32xf32>
    %4 = arith.divf %2, %3 : vector<1x32xf32>
    %5 = arith.mulf %0, %0 : vector<8x32xf32>
    %cst_2 = arith.constant dense<0.000000e+00> : vector<32xf32>
    %6 = vector.multi_reduction <add>, %5, %cst_2 [0] : vector<8x32xf32> to vector<32xf32>
    %7 = vector.shape_cast %6 : vector<32xf32> to vector<1x32xf32>
    %cst_3 = arith.constant 8.000000e+00 : f32
    %8 = vector.broadcast %cst_3 : f32 to vector<1x32xf32>
    %9 = arith.divf %7, %8 : vector<1x32xf32>
    %10 = arith.mulf %4, %4 : vector<1x32xf32>
    %11 = arith.subf %9, %10 : vector<1x32xf32>
    %cst_4 = arith.constant 9.99999974E-6 : f32
    %12 = vector.broadcast %cst_4 : f32 to vector<1x32xf32>
    %13 = arith.addf %11, %12 : vector<1x32xf32>
    %14 = math.rsqrt %13 : vector<1x32xf32>
    %15 = vector.broadcast %14 : vector<1x32xf32> to vector<8x32xf32>
    %16 = arith.mulf %0, %15 : vector<8x32xf32>
    %17 = arith.mulf %4, %14 : vector<1x32xf32>
    %18 = vector.broadcast %17 : vector<1x32xf32> to vector<8x32xf32>
    %19 = arith.subf %16, %18 : vector<8x32xf32>
    %c0_5 = arith.constant 0 : index
    %c0_6 = arith.constant 0 : index
    %c0_7 = arith.constant 0 : index
    %20 = vector.load %arg1[%c0_5, %c0_6, %c0_7] : memref<3x128x128xf32, #tpu.memory_space<vmem>>, vector<1x32x128xf32>
    %21 = vector.shape_cast %20 : vector<1x32x128xf32> to vector<32x128xf32>
    %cst_8 = arith.constant dense<0.000000e+00> : vector<8x128xf32>
    %22 = tpu.matmul %19, %21, %cst_8 {dimension_numbers = #tpu.dot_dimension_numbers<[1], [0], [0], [1], [0, 0, 1, 1], [], []>} : vector<8x32xf32>, vector<32x128xf32>, vector<8x128xf32> -> vector<8x128xf32>
    %c0_9 = arith.constant 0 : index
    %c0_10 = arith.constant 0 : index
    %23 = vector.load %arg2[%c0_9, %c0_10] : memref<3x128xf32, #tpu.memory_space<vmem>>, vector<1x128xf32>
    %24 = vector.broadcast %23 : vector<1x128xf32> to vector<8x128xf32>
    %25 = arith.addf %22, %24 : vector<8x128xf32>
    %cst_11 = arith.constant 0.00999999977 : f32
    %26 = vector.broadcast %cst_11 : f32 to vector<8x128xf32>
    %27 = arith.mulf %26, %25 : vector<8x128xf32>
    %28 = arith.maximumf %25, %27 : vector<8x128xf32>
    %cst_12 = arith.constant dense<0.000000e+00> : vector<128xf32>
    %29 = vector.multi_reduction <add>, %28, %cst_12 [0] : vector<8x128xf32> to vector<128xf32>
    %30 = vector.shape_cast %29 : vector<128xf32> to vector<1x128xf32>
    %cst_13 = arith.constant 8.000000e+00 : f32
    %31 = vector.broadcast %cst_13 : f32 to vector<1x128xf32>
    %32 = arith.divf %30, %31 : vector<1x128xf32>
    %33 = arith.mulf %28, %28 : vector<8x128xf32>
    %cst_14 = arith.constant dense<0.000000e+00> : vector<128xf32>
    %34 = vector.multi_reduction <add>, %33, %cst_14 [0] : vector<8x128xf32> to vector<128xf32>
    %35 = vector.shape_cast %34 : vector<128xf32> to vector<1x128xf32>
    %cst_15 = arith.constant 8.000000e+00 : f32
    %36 = vector.broadcast %cst_15 : f32 to vector<1x128xf32>
    %37 = arith.divf %35, %36 : vector<1x128xf32>
    %38 = arith.mulf %32, %32 : vector<1x128xf32>
    %39 = arith.subf %37, %38 : vector<1x128xf32>
    %cst_16 = arith.constant 9.99999974E-6 : f32
    %40 = vector.broadcast %cst_16 : f32 to vector<1x128xf32>
    %41 = arith.addf %39, %40 : vector<1x128xf32>
    %42 = math.rsqrt %41 : vector<1x128xf32>
    %43 = vector.broadcast %42 : vector<1x128xf32> to vector<8x128xf32>
    %44 = arith.mulf %28, %43 : vector<8x128xf32>
    %45 = arith.mulf %32, %42 : vector<1x128xf32>
    %46 = vector.broadcast %45 : vector<1x128xf32> to vector<8x128xf32>
    %47 = arith.subf %44, %46 : vector<8x128xf32>
    %c1 = arith.constant 1 : index
    %c0_17 = arith.constant 0 : index
    %c0_18 = arith.constant 0 : index
    %48 = vector.load %arg1[%c1, %c0_17, %c0_18] : memref<3x128x128xf32, #tpu.memory_space<vmem>>, vector<1x128x128xf32>
    %49 = vector.shape_cast %48 : vector<1x128x128xf32> to vector<128x128xf32>
    %cst_19 = arith.constant dense<0.000000e+00> : vector<8x128xf32>
    %50 = tpu.matmul %47, %49, %cst_19 {dimension_numbers = #tpu.dot_dimension_numbers<[1], [0], [0], [1], [0, 0, 1, 1], [], []>} : vector<8x128xf32>, vector<128x128xf32>, vector<8x128xf32> -> vector<8x128xf32>
    %c1_20 = arith.constant 1 : index
    %c0_21 = arith.constant 0 : index
    %51 = vector.load %arg2[%c1_20, %c0_21] : memref<3x128xf32, #tpu.memory_space<vmem>>, vector<1x128xf32>
    %52 = vector.broadcast %51 : vector<1x128xf32> to vector<8x128xf32>
    %53 = arith.addf %50, %52 : vector<8x128xf32>
    %cst_22 = arith.constant 0.00999999977 : f32
    %54 = vector.broadcast %cst_22 : f32 to vector<8x128xf32>
    %55 = arith.mulf %54, %53 : vector<8x128xf32>
    %56 = arith.maximumf %53, %55 : vector<8x128xf32>
    %cst_23 = arith.constant dense<0.000000e+00> : vector<128xf32>
    %57 = vector.multi_reduction <add>, %56, %cst_23 [0] : vector<8x128xf32> to vector<128xf32>
    %58 = vector.shape_cast %57 : vector<128xf32> to vector<1x128xf32>
    %cst_24 = arith.constant 8.000000e+00 : f32
    %59 = vector.broadcast %cst_24 : f32 to vector<1x128xf32>
    %60 = arith.divf %58, %59 : vector<1x128xf32>
    %61 = arith.mulf %56, %56 : vector<8x128xf32>
    %cst_25 = arith.constant dense<0.000000e+00> : vector<128xf32>
    %62 = vector.multi_reduction <add>, %61, %cst_25 [0] : vector<8x128xf32> to vector<128xf32>
    %63 = vector.shape_cast %62 : vector<128xf32> to vector<1x128xf32>
    %cst_26 = arith.constant 8.000000e+00 : f32
    %64 = vector.broadcast %cst_26 : f32 to vector<1x128xf32>
    %65 = arith.divf %63, %64 : vector<1x128xf32>
    %66 = arith.mulf %60, %60 : vector<1x128xf32>
    %67 = arith.subf %65, %66 : vector<1x128xf32>
    %cst_27 = arith.constant 9.99999974E-6 : f32
    %68 = vector.broadcast %cst_27 : f32 to vector<1x128xf32>
    %69 = arith.addf %67, %68 : vector<1x128xf32>
    %70 = math.rsqrt %69 : vector<1x128xf32>
    %71 = vector.broadcast %70 : vector<1x128xf32> to vector<8x128xf32>
    %72 = arith.mulf %56, %71 : vector<8x128xf32>
    %73 = arith.mulf %60, %70 : vector<1x128xf32>
    %74 = vector.broadcast %73 : vector<1x128xf32> to vector<8x128xf32>
    %75 = arith.subf %72, %74 : vector<8x128xf32>
    %c2 = arith.constant 2 : index
    %c0_28 = arith.constant 0 : index
    %c0_29 = arith.constant 0 : index
    %76 = vector.load %arg1[%c2, %c0_28, %c0_29] : memref<3x128x128xf32, #tpu.memory_space<vmem>>, vector<1x128x128xf32>
    %77 = vector.shape_cast %76 : vector<1x128x128xf32> to vector<128x128xf32>
    %cst_30 = arith.constant dense<0.000000e+00> : vector<8x128xf32>
    %78 = tpu.matmul %75, %77, %cst_30 {dimension_numbers = #tpu.dot_dimension_numbers<[1], [0], [0], [1], [0, 0, 1, 1], [], []>} : vector<8x128xf32>, vector<128x128xf32>, vector<8x128xf32> -> vector<8x128xf32>
    %c2_31 = arith.constant 2 : index
    %c0_32 = arith.constant 0 : index
    %79 = vector.load %arg2[%c2_31, %c0_32] : memref<3x128xf32, #tpu.memory_space<vmem>>, vector<1x128xf32>
    %80 = vector.broadcast %79 : vector<1x128xf32> to vector<8x128xf32>
    %81 = arith.addf %78, %80 : vector<8x128xf32>
    %82 = tpu.iota {dimensions = array<i32: 1>} : vector<8x128xi32>
    %c4_i32 = arith.constant 4 : i32
    %83 = vector.broadcast %c4_i32 : i32 to vector<8x128xi32>
    %84 = arith.cmpi slt, %82, %83 : vector<8x128xi32>
    %cst_33 = arith.constant -1.000000e+30 : f32
    %85 = vector.broadcast %cst_33 : f32 to vector<8x128xf32>
    %86 = arith.select %84, %81, %85 : vector<8x128xi1>, vector<8x128xf32>
    %cst_34 = arith.constant dense<0xFF800000> : vector<8xf32>
    %87 = vector.multi_reduction <maximumf>, %86, %cst_34 [1] : vector<8x128xf32> to vector<8xf32>
    %88 = vector.shape_cast %87 : vector<8xf32> to vector<8x1xf32>
    %cst_35 = arith.constant -1.000000e+30 : f32
    %89 = vector.broadcast %cst_35 : f32 to vector<8x128xf32>
    %90 = arith.select %84, %89, %81 : vector<8x128xi1>, vector<8x128xf32>
    %cst_36 = arith.constant dense<0xFF800000> : vector<8xf32>
    %91 = vector.multi_reduction <maximumf>, %90, %cst_36 [1] : vector<8x128xf32> to vector<8xf32>
    %92 = vector.shape_cast %91 : vector<8xf32> to vector<8x1xf32>
    %93 = vector.shape_cast %88 : vector<8x1xf32> to vector<8x1xf32>
    %94 = vector.broadcast %93 : vector<8x1xf32> to vector<8x128xf32>
    %95 = vector.shape_cast %92 : vector<8x1xf32> to vector<8x1xf32>
    %96 = vector.broadcast %95 : vector<8x1xf32> to vector<8x128xf32>
    %97 = arith.select %84, %94, %96 : vector<8x128xi1>, vector<8x128xf32>
    %98 = arith.subf %81, %97 : vector<8x128xf32>
    %99 = math.exp %98 : vector<8x128xf32>
    %cst_37 = arith.constant 0.000000e+00 : f32
    %100 = vector.broadcast %cst_37 : f32 to vector<8x128xf32>
    %101 = arith.select %84, %99, %100 : vector<8x128xi1>, vector<8x128xf32>
    %cst_38 = arith.constant dense<0.000000e+00> : vector<8xf32>
    %102 = vector.multi_reduction <add>, %101, %cst_38 [1] : vector<8x128xf32> to vector<8xf32>
    %103 = vector.shape_cast %102 : vector<8xf32> to vector<8x1xf32>
    %cst_39 = arith.constant 0.000000e+00 : f32
    %104 = vector.broadcast %cst_39 : f32 to vector<8x128xf32>
    %105 = arith.select %84, %104, %99 : vector<8x128xi1>, vector<8x128xf32>
    %cst_40 = arith.constant dense<0.000000e+00> : vector<8xf32>
    %106 = vector.multi_reduction <add>, %105, %cst_40 [1] : vector<8x128xf32> to vector<8xf32>
    %107 = vector.shape_cast %106 : vector<8xf32> to vector<8x1xf32>
    %108 = vector.shape_cast %103 : vector<8x1xf32> to vector<8x1xf32>
    %109 = vector.broadcast %108 : vector<8x1xf32> to vector<8x128xf32>
    %110 = vector.shape_cast %107 : vector<8x1xf32> to vector<8x1xf32>
    %111 = vector.broadcast %110 : vector<8x1xf32> to vector<8x128xf32>
    %112 = arith.select %84, %109, %111 : vector<8x128xi1>, vector<8x128xf32>
    %113 = arith.divf %99, %112 : vector<8x128xf32>
    %c0_41 = arith.constant 0 : index
    %c0_42 = arith.constant 0 : index
    %114 = vector.load %arg3[%c0_41, %c0_42] : memref<8x128xf32, #tpu.memory_space<vmem>>, vector<8x128xf32>
    tpu.vector_store %arg3[%c0_41, %c0_42], %113 {strides = array<i32>} : memref<8x128xf32, #tpu.memory_space<vmem>>, vector<8x128xf32>,
    return
  }
}

</mosaic_0001>

<bundles_post_ra>
// kernel: policy_forward.1
= control target key start
LH: loop header
LB: loop body
LE: loop exit
PB: predicated region body
PF: predicated region fallthrough
CT: control target
= control target key end

     0   :  { %8 = vsyncpa [#allocation3], 0  ;;  %s753_s0 = inlined_call_operand.hbm [shape: f32[8,32], index: 0, kind: input, shape index: {}]   ;;  %s754_s1 = inlined_call_operand.hbm [shape: f32[3,128,128], index: 1, kind: input, shape index: {}]   ;;  %s755_s2 = inlined_call_operand.vmem [shape: f32[3,128], index: 2, kind: input, shape index: {}]   ;;  %s756_s3 = inlined_call_operand.vmem [shape: f32[8,128], index: 3, kind: output, shape index: {}]  }
   0x1   :  { %9 = vsyncpa [#allocation5], 0  ;;  %s653_s12 = smov [#allocation2]   ;;  %s654_s14 = smov [#allocation4]  }
   0x2   :  { %s16_s13 = sshll.u32 %s653_s12, 4  ;;  %s25_s15 = sshll.u32 %s654_s14, 4  ;;  %s17_s13 = int_to_ptr.vmem [resolvable:$true] %s16_s13  ;;  %s680_s15 = int_to_ptr.vmem [resolvable:$true] %s25_s15 }
   0x3   :  { %s605_s18 = scalar_lea.hbm %s753_s0, 128 }
   0x4   :  { %p606_p0 = scmp.ne.s32.totalorder %s753_s0, %s605_s18  ;;  %p609_p1 = scmp.lt.u32.totalorder %s605_s18, %s753_s0 }
   0x6   :  { %p611_p2 = pnand %p609_p1, %p606_p0 }
   0x8   :  { %614 = shalt.err (!%p611_p2)
}
   0x9   :  { %s615_s23 = scalar_lea.vmem %s17_s13, 128  ;;  %p620_p4 = scmp.lt.s32.totalorder %s17_s13, %s17_s13 }
   0xa   :  { %p616_p3 = scmp.ne.s32.totalorder %s17_s13, %s615_s23  ;;  %p621_p5 = scmp.lt.s32.totalorder %s615_s23, %s615_s23 }
   0xc   :  { %p622_p6 = por %p621_p5, %p620_p4 }
   0xe   :  { %p623_p7 = pnand %p622_p6, %p616_p3 }
  0x10   :  { %626 = shalt.err (!%p623_p7)
}
  0x11   :  { %19 = dma.hbm_to_vmem [thread:$0]  %s753_s0, 128, %s17_s13, [#allocation3]  }
  0x12   :  { %s627_s28 = scalar_lea.hbm %s754_s1, 6144 }
  0x13   :  { %p628_p8 = scmp.ne.s32.totalorder %s754_s1, %s627_s28  ;;  %p631_p9 = scmp.lt.u32.totalorder %s627_s28, %s754_s1 }
  0x15   :  { %p633_p10 = pnand %p631_p9, %p628_p8 }
  0x17   :  { %636 = shalt.err (!%p633_p10)
}
  0x18   :  { %s637_s6 = scalar_lea.vmem %s680_s15, 6144  ;;  %p642_p12 = scmp.lt.s32.totalorder %s680_s15, %s680_s15 }
  0x19   :  { %p638_p11 = scmp.ne.s32.totalorder %s680_s15, %s637_s6  ;;  %p643_p13 = scmp.lt.s32.totalorder %s637_s6, %s637_s6 }
  0x1b   :  { %p644_p0 = por %p643_p13, %p642_p12 }
  0x1d   :  { %p645_p1 = pnand %p644_p0, %p638_p11 }
  0x1f   :  { %648 = shalt.err (!%p645_p1)
}
  0x20   :  { %s655_s0 = smov 128   ;;  %s656_s7 = smov 8  }
  0x21   :  { %31 = dma.hbm_to_vmem [thread:$0]  %s754_s1, 6144, %s680_s15, [#allocation5], %s655_s0, %s655_s0, %s656_s7  }
  0x22   :  { %649 = dma.done.wait [#allocation3], 128  }
  0x23   :  { %650 = vsyncadd [#allocation3], 4294967168 }
  0x24   :  { %651 = dma.done.wait [#allocation5], 6144  }
  0x25   :  { %652 = vsyncadd [#allocation5], 4294961152  ;;  %v657_v0 = vmov 0.0|0.0   ;;  %vm658_vm0 = vmmov 0   ;;  %v659_v1 = vmov 0.0   ;;  %vm41_vm1 = vcmask 261120  }
  0x26   :  { %534 = vmatprep.subr.bf16.mxu0 %v657_v0  ;;  %461 = vmatprep.mubr.msk.f32.mxu0 %vm658_vm0, %v659_v1  ;;  %v67_v2 = vld [vmem:[#allocation4] sm:$0xff]  ;;  %v68_v3 = vld [vmem:[#allocation4 + $0x8] sm:$0xff]  ;;  %v69_v4 = vld [vmem:[#allocation4 + $0x10] sm:$0xff] }
  0x27   :  { %540 = vmatprep.subr.bf16.mxu1 %v657_v0  ;;  %496 = vmatprep.mubr.msk.f32.mxu1 %vm658_vm0, %v659_v1  ;;  %v535_v5 = vpack.c.bf16 %v68_v3, %v67_v2  ;;  %v70_v6 = vld [vmem:[#allocation4 + $0x18] sm:$0xff]  ;;  %v174_v33 = vld [vmem:[#allocation4 + $0x80] sm:$0xff]  ;;  %v175_v34 = vld [vmem:[#allocation4 + $0x88] sm:$0xff] }
  0x28   :  { %v40_v7 = vld [vmem:[#allocation2] sm:$0xff]  ;;  %v538_v10 = vpack.c.bf16 %v70_v6, %v69_v4  ;;  %v541_v35 = vpack.c.bf16 %v175_v34, %v174_v33  ;;  %v176_v36 = vld [vmem:[#allocation4 + $0x90] sm:$0xff]  ;;  %v178_v39 = vld [vmem:[#allocation4 + $0xa0] sm:$0xff] }
  0x29   :  { %v42_v8 = vsel %vm41_vm1, %v40_v7, 0.0  ;;  %v51_v9 = vmul.f32 %v40_v7, %v40_v7  ;;  %536 = vmatpush3.bf16.msra.mxu0 %v535_v5  ;;  %v177_v37 = vld [vmem:[#allocation4 + $0x98] sm:$0xff]  ;;  %v179_v40 = vld [vmem:[#allocation4 + $0xa8] sm:$0xff]  ;;  %v180_v42 = vld [vmem:[#allocation4 + $0xb0] sm:$0xff] }
  0x2a   :  { %v43_v11 = vrot.slane %v42_v8, 4  ;;  %537 = vmatprep.subr.bf16.mxu0 %v657_v0  ;;  %542 = vmatpush3.bf16.msra.mxu1 %v541_v35  ;;  %v544_v38 = vpack.c.bf16 %v177_v37, %v176_v36  ;;  %v547_v41 = vpack.c.bf16 %v179_v40, %v178_v39  ;;  %v181_v43 = vld [vmem:[#allocation4 + $0xb8] sm:$0xff]  ;;  %v182_v45 = vld [vmem:[#allocation4 + $0xc0] sm:$0xff]  ;;  %v183_v46 = vld [vmem:[#allocation4 + $0xc8] sm:$0xff] }
  0x2b   :  { %v52_v12 = vsel %vm41_vm1, %v51_v9, 0.0  ;;  %543 = vmatprep.subr.bf16.mxu1 %v657_v0  ;;  %v550_v44 = vpack.c.bf16 %v181_v43, %v180_v42  ;;  %v553_v47 = vpack.c.bf16 %v183_v46, %v182_v45  ;;  %v184_v48 = vld [vmem:[#allocation4 + $0xd0] sm:$0xff]  ;;  %v185_v49 = vld [vmem:[#allocation4 + $0xd8] sm:$0xff]  ;;  %v186_v51 = vld [vmem:[#allocation4 + $0xe0] sm:$0xff] }
  0x2c   :  { %v44_v13 = vadd.f32 %v43_v11, %v42_v8  ;;  %v53_v14 = vrot.slane %v52_v12, 4  ;;  %v556_v50 = vpack.c.bf16 %v185_v49, %v184_v48  ;;  %v187_v52 = vld [vmem:[#allocation4 + $0xe8] sm:$0xff]  ;;  %v188_v54 = vld [vmem:[#allocation4 + $0xf0] sm:$0xff]  ;;  %v189_v55 = vld [vmem:[#allocation4 + $0xf8] sm:$0xff] }
  0x2d   :  { %539 = vmatpush3.bf16.msra.mxu0 %v538_v10  ;;  %v559_v53 = vpack.c.bf16 %v187_v52, %v186_v51  ;;  %v562_v56 = vpack.c.bf16 %v189_v55, %v188_v54  ;;  %v410_v57 = vld [vmem:[%s755_s2] ss:$0 sm:$0xff]  ;;  %v298_v34 = vld [vmem:[#allocation4 + $0x140] sm:$0xff]  ;;  %v299_v35 = vld [vmem:[#allocation4 + $0x148] sm:$0xff] }
  0x2e   :  { %v45_v15 = vrot.slane %v44_v13, 2  ;;  %v54_v16 = vadd.f32 %v53_v14, %v52_v12  ;;  %564 = vmatprep.subr.bf16.mxu0 %v657_v0  ;;  %545 = vmatpush3.bf16.msra.mxu1 %v544_v38  ;;  %v577_v36 = vpack.c.bf16 %v299_v35, %v298_v34  ;;  %v300_v37 = vld [vmem:[#allocation4 + $0x150] sm:$0xff]  ;;  %v301_v38 = vld [vmem:[#allocation4 + $0x158] sm:$0xff]  ;;  %v302_v40 = vld [vmem:[#allocation4 + $0x160] sm:$0xff] }
  0x2f   :  { %546 = vmatprep.subr.bf16.mxu1 %v657_v0  ;;  %v580_v39 = vpack.c.bf16 %v301_v38, %v300_v37  ;;  %v304_v43 = vld [vmem:[#allocation4 + $0x170] sm:$0xff] }
  0x30   :  { %v46_v17 = vadd.f32 %v45_v15, %v44_v13  ;;  %v55_v18 = vrot.slane %v54_v16, 2  ;;  %v412_v46 = vld [vmem:[%s755_s2 + $0x1] ss:$0 sm:$0xff] }
  0x32   :  { %v47_v19 = vrot.slane %v46_v17, 1  ;;  %v56_v20 = vadd.f32 %v55_v18, %v54_v16  ;;  %548 = vmatpush3.bf16.msra.mxu1 %v547_v41  ;;  %v303_v41 = vld [vmem:[#allocation4 + $0x168] sm:$0xff] }
  0x33   :  { %549 = vmatprep.subr.bf16.mxu1 %v657_v0  ;;  %v583_v42 = vpack.c.bf16 %v303_v41, %v302_v40 }
  0x34   :  { %v48_v21 = vadd.f32 %v47_v19, %v46_v17  ;;  %v57_v22 = vrot.slane %v56_v20, 1 }
  0x36   :  { %v50_v23 = vmul.f32 0.125, %v48_v21  ;;  %v58_v24 = vadd.f32 %v57_v22, %v56_v20  ;;  %551 = vmatpush3.bf16.msra.mxu1 %v550_v44  ;;  %v290_v22 = vld [vmem:[#allocation4 + $0x100] sm:$0xff]  ;;  %v305_v44 = vld [vmem:[#allocation4 + $0x178] sm:$0xff] }
  0x37   :  { %552 = vmatprep.subr.bf16.mxu1 %v657_v0  ;;  %v586_v45 = vpack.c.bf16 %v305_v44, %v304_v43 }
  0x38   :  { %v59_v25 = vmul.f32 0.125, %v58_v24  ;;  %v60_v26 = vmul.f32 %v50_v23, %v50_v23 }
  0x3a   :  { %v61_v27 = vsub.f32 %v59_v25, %v60_v26  ;;  %554 = vmatpush3.bf16.msra.mxu1 %v553_v47  ;;  %v292_v25 = vld [vmem:[#allocation4 + $0x110] sm:$0xff]  ;;  %v293_v26 = vld [vmem:[#allocation4 + $0x118] sm:$0xff] }
  0x3b   :  { %555 = vmatprep.subr.bf16.mxu1 %v657_v0 }
  0x3c   :  { %v62_v28 = vadd.f32 1e-05, %v61_v27  ;;  %v568_v27 = vpack.c.bf16 %v293_v26, %v292_v25 }
  0x3e   :  { %595 = vrsqrt.f32 %v62_v28  ;;  %557 = vmatpush3.bf16.msra.mxu1 %v556_v50  ;;  %v294_v28 = vld [vmem:[#allocation4 + $0x120] sm:$0xff] }
  0x3f   :  { %558 = vmatprep.subr.bf16.mxu1 %v657_v0 }
  0x42   :  { %560 = vmatpush3.bf16.msra.mxu1 %v559_v53 }
  0x43   :  { %561 = vmatprep.subr.bf16.mxu1 %v657_v0 }
  0x46   :  { %563 = vmatpush3.bf16.msra.mxu1 %v562_v56 }
  0x48   :  { %v596_v29 = vpop.eup %595 }
  0x49   :  { %v64_v30 = vmul.f32 %v596_v29, %v40_v7  ;;  %v65_v31 = vmul.f32 %v596_v29, %v50_v23  ;;  %v291_v23 = vld [vmem:[#allocation4 + $0x108] sm:$0xff] }
  0x4a   :  { %v565_v24 = vpack.c.bf16 %v291_v23, %v290_v22  ;;  %v295_v29 = vld [vmem:[#allocation4 + $0x128] sm:$0xff] }
  0x4b   :  { %v66_v32 = vsub.f32 %v64_v30, %v65_v31  ;;  %v571_v30 = vpack.c.bf16 %v295_v29, %v294_v28  ;;  %v296_v31 = vld [vmem:[#allocation4 + $0x130] sm:$0xff] }
  0x4d   :  { %462 = vmatmul.mubr.msk.f32.vlgmr.msra.gmra.mrb[0].mxu0 %vm41_vm1, %v66_v32  ;;  %v297_v32 = vld [vmem:[#allocation4 + $0x138] sm:$0xff] }
  0x4e   :  { %531 = vmatprep.mubr.msk.f32.mxu0 %vm658_vm0, %v659_v1  ;;  %566 = vmatpush3.bf16.msra.mxu0 %v565_v24  ;;  %v574_v33 = vpack.c.bf16 %v297_v32, %v296_v31 }
  0x4f   :  { %567 = vmatprep.subr.bf16.mxu0 %v657_v0 }
  0x52   :  { %569 = vmatpush3.bf16.msra.mxu0 %v568_v27 }
  0x53   :  { %570 = vmatprep.subr.bf16.mxu0 %v657_v0 }
  0x56   :  { %572 = vmatpush3.bf16.msra.mxu0 %v571_v30 }
  0x57   :  { %573 = vmatprep.subr.bf16.mxu0 %v657_v0 }
  0x5a   :  { %575 = vmatpush3.bf16.msra.mxu0 %v574_v33 }
  0x5b   :  { %576 = vmatprep.subr.bf16.mxu0 %v657_v0 }
  0x5e   :  { %578 = vmatpush3.bf16.msra.mxu0 %v577_v36 }
  0x5f   :  { %579 = vmatprep.subr.bf16.mxu0 %v657_v0 }
  0x62   :  { %581 = vmatpush3.bf16.msra.mxu0 %v580_v39 }
  0x63   :  { %582 = vmatprep.subr.bf16.mxu0 %v657_v0 }
  0x66   :  { %584 = vmatpush3.bf16.msra.mxu0 %v583_v42 }
  0x67   :  { %585 = vmatprep.subr.bf16.mxu0 %v657_v0 }
  0x6a   :  { %587 = vmatpush3.bf16.msra.mxu0 %v586_v45 }
 0x120   :  { %v145_v58 = vpop.f32.mrb[0].mxu0 }
 0x121   :  { %v146_v59 = vadd.f32 %v410_v57, %v145_v58  ;;  %v463_v60 = vpop.f32.mrb[1].mxu0 }
 0x123   :  { %v149_v61 = vmul.f32 0.01, %v146_v59 }
 0x125   :  { %v150_v62 = vmax.f32 %v146_v59, %v149_v61 }
 0x127   :  { %v151_v63 = vrot.slane %v150_v62, 4  ;;  %v158_v1 = vmul.f32 %v150_v62, %v150_v62 }
 0x129   :  { %v152_v2 = vadd.f32 %v151_v63, %v150_v62  ;;  %v159_v3 = vrot.slane %v158_v1, 4 }
 0x12b   :  { %v160_v4 = vadd.f32 %v159_v3, %v158_v1  ;;  %v153_v5 = vrot.slane %v152_v2, 2 }
 0x12d   :  { %v161_v6 = vrot.slane %v160_v4, 2  ;;  %v154_v7 = vadd.f32 %v153_v5, %v152_v2 }
 0x12f   :  { %v162_v8 = vadd.f32 %v161_v6, %v160_v4  ;;  %v155_v9 = vrot.slane %v154_v7, 1 }
 0x131   :  { %v156_v10 = vadd.f32 %v155_v9, %v154_v7  ;;  %v163_v11 = vrot.slane %v162_v8, 1 }
 0x133   :  { %v157_v12 = vmul.f32 0.125, %v156_v10  ;;  %v164_v13 = vadd.f32 %v163_v11, %v162_v8  ;;  %v381_v10 = vlaneseq }
 0x135   :  { %v165_v14 = vmul.f32 0.125, %v164_v13  ;;  %v166_v15 = vmul.f32 %v157_v12, %v157_v12  ;;  %v382_v11 = vand.u32 127, %v381_v10 }
 0x137   :  { %v167_v16 = vsub.f32 %v165_v14, %v166_v15  ;;  %vm383_vm2 = vcmp.lt.s32.totalorder %v382_v11, 4 }
 0x139   :  { %v168_v17 = vadd.f32 1e-05, %v167_v16 }
 0x13b   :  { %597 = vrsqrt.f32 %v168_v17 }
 0x145   :  { %v598_v18 = vpop.eup %597 }
 0x146   :  { %v170_v19 = vmul.f32 %v598_v18, %v150_v62  ;;  %v171_v20 = vmul.f32 %v598_v18, %v157_v12  ;;  %v413_v12 = vld [vmem:[%s755_s2 + $0x2] ss:$0 sm:$0xff] }
 0x148   :  { %v172_v21 = vsub.f32 %v170_v19, %v171_v20 }
 0x14a   :  { %497 = vmatmul.mubr.f32.vlgmr.msra.gmra.mrb[0].mxu1 %v172_v21 }
 0x21d   :  { %v261_v47 = vpop.f32.mrb[0].mxu1 }
 0x21e   :  { %v262_v48 = vadd.f32 %v412_v46, %v261_v47  ;;  %v498_v49 = vpop.f32.mrb[1].mxu1 }
 0x220   :  { %v265_v50 = vmul.f32 0.01, %v262_v48 }
 0x222   :  { %v266_v51 = vmax.f32 %v262_v48, %v265_v50 }
 0x224   :  { %v267_v52 = vrot.slane %v266_v51, 4  ;;  %v274_v53 = vmul.f32 %v266_v51, %v266_v51 }
 0x226   :  { %v268_v54 = vadd.f32 %v267_v52, %v266_v51  ;;  %v275_v55 = vrot.slane %v274_v53, 4 }
 0x228   :  { %v269_v56 = vrot.slane %v268_v54, 2  ;;  %v276_v57 = vadd.f32 %v275_v55, %v274_v53 }
 0x22a   :  { %v270_v58 = vadd.f32 %v269_v56, %v268_v54  ;;  %v277_v59 = vrot.slane %v276_v57, 2 }
 0x22c   :  { %v278_v60 = vadd.f32 %v277_v59, %v276_v57  ;;  %v271_v0 = vrot.slane %v270_v58, 1 }
 0x22e   :  { %v279_v61 = vrot.slane %v278_v60, 1  ;;  %v272_v62 = vadd.f32 %v271_v0, %v270_v58 }
 0x230   :  { %v280_v63 = vadd.f32 %v279_v61, %v278_v60  ;;  %v273_v1 = vmul.f32 0.125, %v272_v62 }
 0x232   :  { %v281_v2 = vmul.f32 0.125, %v280_v63  ;;  %v282_v3 = vmul.f32 %v273_v1, %v273_v1 }
 0x234   :  { %v283_v4 = vsub.f32 %v281_v2, %v282_v3 }
 0x236   :  { %v284_v5 = vadd.f32 1e-05, %v283_v4 }
 0x238   :  { %599 = vrsqrt.f32 %v284_v5 }
 0x242   :  { %v600_v6 = vpop.eup %599 }
 0x243   :  { %v286_v7 = vmul.f32 %v600_v6, %v266_v51  ;;  %v287_v8 = vmul.f32 %v600_v6, %v273_v1 }
 0x245   :  { %v288_v9 = vsub.f32 %v286_v7, %v287_v8 }
 0x247   :  { %532 = vmatmul.mubr.f32.vlgmr.msra.gmra.mrb[2].mxu0 %v288_v9 }
 0x31a   :  { %v377_v13 = vpop.f32.mrb[2].mxu0 }
 0x31b   :  { %v378_v14 = vadd.f32 %v413_v12, %v377_v13  ;;  %v533_v15 = vpop.f32.mrb[3].mxu0 }
 0x31d   :  { %v384_v16 = vsel %vm383_vm2, %v378_v14, -1e+30  ;;  %v387_v17 = vsel %vm383_vm2, -1e+30, %v378_v14 }
 0x31e   :  { %385 = vmax.xlane.f32.xlu0 %v384_v16 }
 0x322   :  { %388 = vmax.xlane.f32.xlu0 %v387_v17 }
 0x3ab   :  { %v386_v18 = vpop.xlane.xlu0 %385 }
 0x3af   :  { %v389_v19 = vpop.xlane.xlu0 %388 }
 0x3b0   :  { %v390_v20 = vsel %vm383_vm2, %v386_v18, %v389_v19 }
 0x3b1   :  { %v391_v21 = vsub.f32 %v378_v14, %v390_v20 }
 0x3b3   :  { %v392_v22 = vmul.f32 1.442695, %v391_v21 }
 0x3b5   :  { %601 = vpow2.f32 %v392_v22 }
 0x3bf   :  { %v602_v23 = vpop.eup %601 }
 0x3c0   :  { %v394_v24 = vsel %vm383_vm2, %v602_v23, 0.0  ;;  %v397_v25 = vsel %vm383_vm2, 0.0, %v602_v23 }
 0x3c1   :  { %395 = vadd.xlane.f32.xlu1 %v394_v24 }
 0x3c5   :  { %398 = vadd.xlane.f32.xlu1 %v397_v25 }
 0x44e   :  { %v396_v26 = vpop.xlane.xlu1 %395 }
 0x452   :  { %v399_v27 = vpop.xlane.xlu1 %398 }
 0x453   :  { %v400_v28 = vsel %vm383_vm2, %v396_v26, %v399_v27 }
 0x454   :  { %603 = vrcp.f32 %v400_v28 }
 0x45e   :  { %v604_v29 = vpop.eup %603 }
 0x45f   :  { %v402_v30 = vmul.f32 %v604_v29, %v602_v23 }
 0x461   :  { %403 = vst [vmem:[%s756_s3] sm:$0xff] %v402_v30 }
 0x462   :  { %408 = vsyncpa [#allocation3], 1 }
 0x463   :  { %409 = vsyncpa [#allocation5], 1 }

</bundles_post_ra>
